<compile_context>
chip_gen: v7x
topology: tpu7x:2x2x1
jax: 0.10.0
libtpu: 0.0.40
codegen_flags: <defaults>
</compile_context>

<pallas_src>
import math

import jax
import jax.numpy as jnp
import numpy as np
from jax import lax
from jax.experimental import pallas as pl
from jax.experimental.pallas import tpu as pltpu


def _round_up(x, m):
    return ((x + m - 1) // m) * m


def _pick_tile(dim, target, granule=128):
    """Largest tile <= target that is a multiple of `granule`; prefers a tile
    that divides `dim` exactly (so the array never needs padding).
    Returns (tile, padded_dim)."""
    target = max(granule, (min(target, _round_up(dim, granule)) // granule) * granule)
    if dim % granule == 0:
        for t in range(target, granule - 1, -granule):
            if dim % t == 0:
                return t, dim
    return target, _round_up(dim, target)


def _working_set_bytes(tm, tn, tk, rank, x_bytes, w_bytes, o_bytes, use_acc):
    """Rough double-buffered VMEM working-set estimate for one grid step."""
    ws = 2 * tm * tk * x_bytes          # x tile (double buffered)
    ws += 2 * tn * tk * w_bytes         # W0 tile (dominant stream)
    ws += 2 * tm * tn * o_bytes         # output tile
    ws += 2 * (tm * rank + tn * rank + tn) * 4   # xa, factor*A[:out], bias
    if use_acc:
        ws += tm * tn * 4               # f32 accumulator scratch
    return ws


def _singlora_kernel_f32out(x_ref, w0_ref, b_ref, xa_ref, a_out_ref, y_ref):
    """Grid = (B/tm, N/tn, K/tk), K innermost. Output dtype is f32, so partial
    sums accumulate directly in the resident output block (no scratch copy)."""
    k = pl.program_id(2)

    @pl.when(k == 0)
    def _init():
        y_ref[...] = jnp.zeros_like(y_ref)

    # x tile [tm, tk] contracted with W0 tile [tn, tk] along the last dims:
    # the (out, in) weight tile feeds the MXU as-is, no transpose, no dense
    # update materialization.
    y_ref[...] += lax.dot_general(
        x_ref[...], w0_ref[...],
        dimension_numbers=(((1,), (1,)), ((), ())),
        preferred_element_type=jnp.float32)

    @pl.when(k == pl.num_programs(2) - 1)
    def _finalize():
        # Rank-r epilogue: (x @ A) [tm, r]  x  (factor * A[:out]) [tn, r]^T.
        corr = lax.dot_general(
            xa_ref[...], a_out_ref[...],
            dimension_numbers=(((1,), (1,)), ((), ())),
            preferred_element_type=jnp.float32)
        y_ref[...] += corr + b_ref[...]


def _singlora_kernel_acc(x_ref, w0_ref, b_ref, xa_ref, a_out_ref, y_ref, acc_ref):
    """As above, but with an f32 scratch accumulator for narrow (e.g. bf16)
    output dtypes; y_ref is only touched by the final cast/store."""
    k = pl.program_id(2)

    @pl.when(k == 0)
    def _init():
        acc_ref[...] = jnp.zeros_like(acc_ref)

    acc_ref[...] += lax.dot_general(
        x_ref[...], w0_ref[...],
        dimension_numbers=(((1,), (1,)), ((), ())),
        preferred_element_type=jnp.float32)

    @pl.when(k == pl.num_programs(2) - 1)
    def _finalize():
        corr = lax.dot_general(
            xa_ref[...], a_out_ref[...],
            dimension_numbers=(((1,), (1,)), ((), ())),
            preferred_element_type=jnp.float32)
        y_ref[...] = (acc_ref[...] + corr + b_ref[...]).astype(y_ref.dtype)


def singlora_forward(x, w0, bias, A, *, rank, alpha, ramp_up_steps,
                     training_step, tm=None, tn=None, tk=None,
                     out_dtype=None, buffer_count=None):
    """y = x @ (W0 + factor * (A[:out] @ A^T))^T + bias, streamed and tiled.

    W0 (and x) are streamed in the dtype they are passed in; cast W0 to bf16
    once at parameter-setup time — not per call — to halve its HBM stream.
    """
    B, d_in = x.shape
    d_out, d_in_w = w0.shape
    assert d_in_w == d_in
    # TODO(synk): the original module's in_features < out_features (non-square)
    # branch builds a (d_in, d_out)-shaped update for a (d_out, d_in) weight and
    # would raise in PyTorch itself; only the well-defined d_in >= d_out case is kept.
    assert d_in >= d_out, "SingLoRA kernel implements the in_features >= out_features case"
    assert A.shape == (d_in, rank)

    out_dtype = x.dtype if out_dtype is None else out_dtype
    use_acc = np.dtype(out_dtype) != np.dtype(np.float32)

    # Ramp factor (runtime/traced scalar -> no recompile per training step),
    # folded into the tiny rank-r operand instead of scaling full (tm, tn) tiles.
    step = jnp.asarray(training_step, dtype=jnp.float32)
    factor = jnp.minimum(step / float(ramp_up_steps), 1.0) * (float(alpha) / float(rank))

    # Rank-r contraction hoisted out of the Pallas k-loop: xa = x @ A is tiny
    # ([B, r]) and was previously recomputed for every (j, k) grid step.
    xa = jnp.dot(x.astype(jnp.float32), A.astype(jnp.float32),
                 precision=lax.Precision.HIGHEST)
    a_out = factor * A[:d_out].astype(jnp.float32)

    # ---- Tile selection ----------------------------------------------------
    if tm is None:
        tm = min(256, _round_up(B, 8))
    tm = max(8, _round_up(min(tm, _round_up(B, 8)), 8))
    Bp = _round_up(B, tm)

    auto_tn = tn is None
    if auto_tn:
        tn, Np = _pick_tile(d_out, 512)
    else:
        tn = max(128, _round_up(min(tn, _round_up(d_out, 128)), 128))
        Np = _round_up(d_out, tn)

    if tk is None:
        tk, Kp = _pick_tile(d_in, 1024)
    else:
        tk = max(128, _round_up(min(tk, _round_up(d_in, 128)), 128))
        Kp = _round_up(d_in, tk)

    # v7x has 2 TensorCores sharded over the "parallel" grid axes; keep the
    # parallel sub-grid at >= 2 steps when possible so neither core idles.
    if auto_tn and (Bp // tm) * (Np // tn) < 2 and Np >= 256:
        tn, Np = _pick_tile(Np, Np // 2)

    # Keep the double-buffered working set v7x-safe (64 MiB physical VMEM/TC).
    x_bytes = np.dtype(w0.dtype).itemsize   # x is streamed in W0's dtype
    w_bytes = np.dtype(w0.dtype).itemsize
    o_bytes = np.dtype(out_dtype).itemsize
    budget = 40 * 1024 * 1024
    while (_working_set_bytes(tm, tn, tk, rank, x_bytes, w_bytes, o_bytes, use_acc)
           > budget and tk > 128):
        tk, Kp = _pick_tile(d_in, tk // 2)
    ws = _working_set_bytes(tm, tn, tk, rank, x_bytes, w_bytes, o_bytes, use_acc)
    vmem_limit = int(min(48 * 1024 * 1024, max(32 * 1024 * 1024, 1.5 * ws)))

    # ---- Padding (skipped entirely when tiles divide the dims) --------------
    x_s = x if x.dtype == w0.dtype else x.astype(w0.dtype)
    xp = x_s if (Bp, Kp) == (B, d_in) else jnp.pad(x_s, ((0, Bp - B), (0, Kp - d_in)))
    # TODO(synk): for d_out/d_in not divisible by 128, pre-pad W0 once at
    # parameter-setup time so this per-call pad (a full HBM copy of the largest
    # tensor) never runs in the hot path; for divisible shapes it is skipped.
    w0p = (w0 if (Np, Kp) == (d_out, d_in)
           else jnp.pad(w0, ((0, Np - d_out), (0, Kp - d_in))))
    b32 = bias.astype(jnp.float32)
    bp = (b32 if Np == d_out else jnp.pad(b32, (0, Np - d_out))).reshape(1, Np)
    xap = xa if Bp == B else jnp.pad(xa, ((0, Bp - B), (0, 0)))
    a_outp = a_out if Np == d_out else jnp.pad(a_out, ((0, Np - d_out), (0, 0)))

    grid = (Bp // tm, Np // tn, Kp // tk)

    def stream_spec(shape, index_map):
        # Optional deeper pipelining for skinny-batch cases (benchmark knob).
        if buffer_count is not None and buffer_count > 2:
            return pl.BlockSpec(shape, index_map, pipeline_mode=pl.Buffered(buffer_count))
        return pl.BlockSpec(shape, index_map)

    in_specs = [
        stream_spec((tm, tk), lambda i, j, k: (i, k)),    # x
        stream_spec((tn, tk), lambda i, j, k: (j, k)),    # W0 (dominant stream)
        pl.BlockSpec((1, tn), lambda i, j, k: (0, j)),    # bias (f32)
        pl.BlockSpec((tm, rank), lambda i, j, k: (i, 0)),  # x @ A (f32)
        pl.BlockSpec((tn, rank), lambda i, j, k: (j, 0)),  # factor * A[:out] (f32)
    ]

    kernel = _singlora_kernel_acc if use_acc else _singlora_kernel_f32out
    scratch = [pltpu.VMEM((tm, tn), jnp.float32)] if use_acc else []

    out = pl.pallas_call(
        kernel,
        grid=grid,
        out_shape=jax.ShapeDtypeStruct((Bp, Np), out_dtype),
        in_specs=in_specs,
        out_specs=pl.BlockSpec((tm, tn), lambda i, j, k: (i, j)),
        scratch_shapes=scratch,
        compiler_params=pltpu.CompilerParams(
            dimension_semantics=("parallel", "parallel", "arbitrary"),
            vmem_limit_bytes=vmem_limit,
        ),
    )(xp, w0p, bp, xap, a_outp)

    return out[:B, :d_out]


def _kaiming_uniform(key, shape, a=math.sqrt(5)):
    """nn.init.kaiming_uniform_ for a 2D tensor: fan_in = shape[1]."""
    fan_in = shape[1]
    gain = math.sqrt(2.0 / (1.0 + a * a))
    bound = gain * math.sqrt(3.0 / fan_in)
    return jax.random.uniform(key, shape, jnp.float32, -bound, bound)


if __name__ == "__main__":
    # Deterministic setup consistent with the module: nn.Linear(512 -> 256),
    # rank=8, alpha=16, T=10, training_step buffer = 3 (eval mode).
    batch = 8
    in_features = 512
    out_features = 256
    rank = 8
    alpha = 16.0
    ramp_up_steps = 10
    training_step = 3.0

    key = jax.random.PRNGKey(0)
    kx, kw, kb, ka = jax.random.split(key, 4)

    x = jax.random.normal(kx, (batch, in_features), jnp.float32)
    w0 = _kaiming_uniform(kw, (out_features, in_features))
    b_bound = 1.0 / math.sqrt(in_features)
    bias = jax.random.uniform(kb, (out_features,), jnp.float32, -b_bound, b_bound)
    A = _kaiming_uniform(ka, (max(in_features, out_features), rank))

    # float64 numpy reference of the original module semantics.
    xn = np.asarray(x, np.float64)
    wn = np.asarray(w0, np.float64)
    bn = np.asarray(bias, np.float64)
    an = np.asarray(A, np.float64)
    ramp = min(training_step / ramp_up_steps, 1.0)
    update = ramp * (alpha / rank) * (an @ an.T)[:out_features, :in_features]
    y_ref = xn @ (wn + update).T + bn

    # 1) f32 run with small explicit tiles so the full (i, j, k) grid and the
    #    accumulate-directly-into-output path are exercised; tight tolerance.
    y32 = singlora_forward(
        x, w0, bias, A,
        rank=rank, alpha=alpha, ramp_up_steps=ramp_up_steps,
        training_step=training_step, tm=8, tn=128, tk=256)
    y32 = jax.block_until_ready(y32)
    np.testing.assert_allclose(np.asarray(y32, np.float64), y_ref, rtol=1e-4, atol=1e-4)

    # 2) bf16-streamed run: params cast to bf16 ONCE outside the forward
    #    (halves the W0 HBM stream, native-bf16 MXU rate); exercises automatic
    #    tile selection, the >=2-parallel-steps heuristic, and the f32-scratch
    #    output path. Reference is taken on the bf16-quantized inputs.
    x_bf = x.astype(jnp.bfloat16)
    w0_bf = w0.astype(jnp.bfloat16)
    y_bf = singlora_forward(
        x_bf, w0_bf, bias, A,
        rank=rank, alpha=alpha, ramp_up_steps=ramp_up_steps,
        training_step=training_step)
    y_bf = jax.block_until_ready(y_bf)

    xb = np.asarray(x_bf.astype(jnp.float32), np.float64)
    wb = np.asarray(w0_bf.astype(jnp.float32), np.float64)
    y_ref_bf = xb @ (wb + update).T + bn
    np.testing.assert_allclose(np.asarray(y_bf.astype(jnp.float32), np.float64),
                               y_ref_bf, rtol=2e-2, atol=2e-2)

    print("KERNEL_OK")
</pallas_src>

<mosaic_0001>
module attributes {stable_mosaic.version = 11 : i64} {
  func.func @_singlora_kernel_f32out(%arg0: i32, %arg1: i32, %arg2: i32, %arg3: memref<8x256xf32, #tpu.memory_space<vmem>>, %arg4: memref<128x256xf32, #tpu.memory_space<vmem>>, %arg5: memref<1x128xf32, #tpu.memory_space<vmem>>, %arg6: memref<8x8xf32, #tpu.memory_space<vmem>>, %arg7: memref<128x8xf32, #tpu.memory_space<vmem>>, %arg8: memref<8x128xf32, #tpu.memory_space<vmem>>) attributes {dimension_semantics = [#tpu.dimension_semantics<parallel>, #tpu.dimension_semantics<parallel>, #tpu.dimension_semantics<arbitrary>], iteration_bounds = array<i64: 1, 2, 2>, scalar_prefetch = 0 : i64, scratch_operands = 0 : i64, tpu.core_type = #tpu.core_type<tc>, window_params = [{transform_indices = @transform_0, window_bounds = array<i64: 8, 256>}, {transform_indices = @transform_1, window_bounds = array<i64: 128, 256>}, {transform_indices = @transform_2, window_bounds = array<i64: 1, 128>}, {transform_indices = @transform_3, window_bounds = array<i64: 8, 8>}, {transform_indices = @transform_4, window_bounds = array<i64: 128, 8>}, {transform_indices = @transform_5, window_bounds = array<i64: 8, 128>}]} {
    %c0_i32 = arith.constant 0 : i32
    %0 = arith.cmpi eq, %arg2, %c0_i32 : i32
    %1 = arith.extui %0 : i1 to i32
    %c0_i32_0 = arith.constant 0 : i32
    %2 = arith.cmpi ne, %1, %c0_i32_0 : i32
    scf.if %2 {
      %cst_9 = arith.constant 0.000000e+00 : f32
      %12 = vector.broadcast %cst_9 : f32 to vector<8x128xf32>
      %c0_10 = arith.constant 0 : index
      %c0_11 = arith.constant 0 : index
      %13 = vector.load %arg8[%c0_10, %c0_11] : memref<8x128xf32, #tpu.memory_space<vmem>>, vector<8x128xf32>
      tpu.vector_store %arg8[%c0_10, %c0_11], %12 {strides = array<i32>} : memref<8x128xf32, #tpu.memory_space<vmem>>, vector<8x128xf32>,
    } else {
    }
    %c0 = arith.constant 0 : index
    %c0_1 = arith.constant 0 : index
    %3 = vector.load %arg8[%c0, %c0_1] : memref<8x128xf32, #tpu.memory_space<vmem>>, vector<8x128xf32>
    %c0_2 = arith.constant 0 : index
    %c0_3 = arith.constant 0 : index
    %4 = vector.load %arg3[%c0_2, %c0_3] : memref<8x256xf32, #tpu.memory_space<vmem>>, vector<8x256xf32>
    %c0_4 = arith.constant 0 : index
    %c0_5 = arith.constant 0 : index
    %5 = vector.load %arg4[%c0_4, %c0_5] : memref<128x256xf32, #tpu.memory_space<vmem>>, vector<128x256xf32>
    %cst = arith.constant dense<0.000000e+00> : vector<8x128xf32>
    %6 = tpu.matmul %4, %5, %cst {dimension_numbers = #tpu.dot_dimension_numbers<[1], [1], [0], [0], [0, 0, 1, 0], [], []>} : vector<8x256xf32>, vector<128x256xf32>, vector<8x128xf32> -> vector<8x128xf32>
    %7 = arith.addf %3, %6 : vector<8x128xf32>
    %c0_6 = arith.constant 0 : index
    %c0_7 = arith.constant 0 : index
    %8 = vector.load %arg8[%c0_6, %c0_7] : memref<8x128xf32, #tpu.memory_space<vmem>>, vector<8x128xf32>
    tpu.vector_store %arg8[%c0_6, %c0_7], %7 {strides = array<i32>} : memref<8x128xf32, #tpu.memory_space<vmem>>, vector<8x128xf32>,
    %c1_i32 = arith.constant 1 : i32
    %9 = arith.cmpi eq, %arg2, %c1_i32 : i32
    %10 = arith.extui %9 : i1 to i32
    %c0_i32_8 = arith.constant 0 : i32
    %11 = arith.cmpi ne, %10, %c0_i32_8 : i32
    scf.if %11 {
      %c0_9 = arith.constant 0 : index
      %c0_10 = arith.constant 0 : index
      %12 = vector.load %arg6[%c0_9, %c0_10] : memref<8x8xf32, #tpu.memory_space<vmem>>, vector<8x8xf32>
      %c0_11 = arith.constant 0 : index
      %c0_12 = arith.constant 0 : index
      %13 = vector.load %arg7[%c0_11, %c0_12] : memref<128x8xf32, #tpu.memory_space<vmem>>, vector<128x8xf32>
      %cst_13 = arith.constant dense<0.000000e+00> : vector<8x128xf32>
      %14 = tpu.matmul %12, %13, %cst_13 {dimension_numbers = #tpu.dot_dimension_numbers<[1], [1], [0], [0], [0, 0, 1, 0], [], []>} : vector<8x8xf32>, vector<128x8xf32>, vector<8x128xf32> -> vector<8x128xf32>
      %c0_14 = arith.constant 0 : index
      %c0_15 = arith.constant 0 : index
      %15 = vector.load %arg8[%c0_14, %c0_15] : memref<8x128xf32, #tpu.memory_space<vmem>>, vector<8x128xf32>
      %c0_16 = arith.constant 0 : index
      %c0_17 = arith.constant 0 : index
      %16 = vector.load %arg5[%c0_16, %c0_17] : memref<1x128xf32, #tpu.memory_space<vmem>>, vector<1x128xf32>
      %17 = vector.broadcast %16 : vector<1x128xf32> to vector<8x128xf32>
      %18 = arith.addf %14, %17 : vector<8x128xf32>
      %19 = arith.addf %15, %18 : vector<8x128xf32>
      %c0_18 = arith.constant 0 : index
      %c0_19 = arith.constant 0 : index
      %20 = vector.load %arg8[%c0_18, %c0_19] : memref<8x128xf32, #tpu.memory_space<vmem>>, vector<8x128xf32>
      tpu.vector_store %arg8[%c0_18, %c0_19], %19 {strides = array<i32>} : memref<8x128xf32, #tpu.memory_space<vmem>>, vector<8x128xf32>,
    } else {
    }
    return
  }
  func.func @transform_0(%arg0: i32, %arg1: i32, %arg2: i32) -> (i32, i32) {
    %c0_i32 = arith.constant 0 : i32
    return %arg0, %arg2 : i32, i32
  }
  func.func @transform_1(%arg0: i32, %arg1: i32, %arg2: i32) -> (i32, i32) {
    %c0_i32 = arith.constant 0 : i32
    return %arg1, %arg2 : i32, i32
  }
  func.func @transform_2(%arg0: i32, %arg1: i32, %arg2: i32) -> (i32, i32) {
    %c0_i32 = arith.constant 0 : i32
    %c0_i32_0 = arith.constant 0 : i32
    return %c0_i32, %arg1 : i32, i32
  }
  func.func @transform_3(%arg0: i32, %arg1: i32, %arg2: i32) -> (i32, i32) {
    %c0_i32 = arith.constant 0 : i32
    %c0_i32_0 = arith.constant 0 : i32
    return %arg0, %c0_i32 : i32, i32
  }
  func.func @transform_4(%arg0: i32, %arg1: i32, %arg2: i32) -> (i32, i32) {
    %c0_i32 = arith.constant 0 : i32
    %c0_i32_0 = arith.constant 0 : i32
    return %arg1, %c0_i32 : i32, i32
  }
  func.func @transform_5(%arg0: i32, %arg1: i32, %arg2: i32) -> (i32, i32) {
    %c0_i32 = arith.constant 0 : i32
    return %arg0, %arg1 : i32, i32
  }
}

</mosaic_0001>

<bundles_post_ra>
// kernel: tpu_custom_call.1
= control target key start
LH: loop header
LB: loop body
LE: loop exit
PB: predicated region body
PF: predicated region fallthrough
CT: control target
= control target key end

     0   :  { %s1574_s0 = inlined_call_operand.vmem [shape: f32[8,512], index: 0, kind: input, shape index: {}]   ;;  %s1575_s1 = inlined_call_operand.hbm [shape: f32[256,512], index: 1, kind: input, shape index: {}]   ;;  %s1576_s2 = inlined_call_operand.vmem [shape: f32[1,256], index: 2, kind: input, shape index: {}]   ;;  %s1577_s3 = inlined_call_operand.vmem [shape: f32[8,8], index: 3, kind: input, shape index: {}]   ;;  %s1578_s4 = inlined_call_operand.vmem [shape: f32[256,8], index: 4, kind: input, shape index: {}]   ;;  %s1579_s5 = inlined_call_operand.hbm [shape: f32[8,256], index: 5, kind: output, shape index: {}]  }
   0x1   :  { %1588 = sst [smem:[#allocation14_spill]] %s1575_s1 }
   0x2   :  { %1589 = sst [smem:[#allocation15_spill]] %s1579_s5 }
   0x3   :  { %10 = vsyncpa [#allocation3], 0 }
   0x4   :  { %12 = vsyncpa [#allocation3 + $0x1], 0 }
   0x5   :  { %13 = vsyncpa [#allocation4], 0 }
   0x6   :  { %15 = vsyncpa [#allocation4 + $0x1], 0  ;;  %s1244_s18 = smov 0   ;;  %s1246_s19 = smov 0  }
   0x7   :  { %s1248_s20 = smov 0   ;;  %s1250_s21 = smov 0  }
   0x8   :  { %s1252_s22 = smov 0   ;;  %s1254_s23 = smov 0  }
   0x9   :  { %s1256_s24 = smov 0   ;;  %s1258_s25 = smov 0  }
   0xa   :  { %s1260_s26 = smov 0   ;;  %s1262_s27 = smov 0  }
   0xb   :  { %s1264_s28 = smov 0  }
   0xc LB: > { %1590 = sst [smem:[#allocation8_spill]] %s1183_s23  ;;  %s784_s29 = sadd.s32 4294967295, %s1203_s28   ;;  %s1203_s28 = sphi %s1264_s28, %s21_s28   ;;  %s1199_s27 = sphi %s1262_s27, %s1614_s27   ;;  %s1195_s26 = sphi %s1260_s26, %s1613_s26   ;;  %s1191_s25 = sphi %s1258_s25, %s1612_s25   ;;  %s1187_s24 = sphi %s1256_s24, %s1611_s24   ;;  %s1183_s23 = sphi %s1254_s23, %s1610_s23   ;;  %s1179_s22 = sphi %s1252_s22, %s1619_s22   ;;  %s1175_s21 = sphi %s1250_s21, %s1618_s21   ;;  %s1171_s20 = sphi %s1248_s20, %s1617_s20   ;;  %s1167_s19 = sphi %s1246_s19, %s1616_s19   ;;  %s1163_s18 = sphi %s1244_s18, %s1615_s18  }
   0xd   : > { %1591 = sst [smem:[#allocation9_spill]] %s1195_s26  ;;  %s785_s30 = sadd.s32 4294967294, %s1203_s28  }
   0xe   : > { %1592 = sst [smem:[#allocation10_spill]] %s1199_s27  ;;  %s33_s6 = sadd.s32 1, %s1195_s26 }
   0xf   : > { %s36_s7 = sadd.s32 1, %s1199_s27  ;;  %p34_p0 = scmp.ge.s32.totalorder %s33_s6, 2 }
  0x10   : > { %s77_s8 = sadd.s32 1, %s1183_s23  ;;  %p84_p1 = scmp.ne.s32.totalorder %s1183_s23, %s1179_s22 }
  0x11   : > { %p85_p2 = scmp.eq.s32.totalorder %s1203_s28, 0  ;;  %s1621_s6 = smov (%p34_p0, %s33_s6), 0 }
  0x12   : > { %1593 = sst [smem:[#allocation11_spill]] %s1621_s6  ;;  %s1623_s7 = smov (!%p34_p0, %s36_s7), %s1199_s27 }
  0x13   : > { %s73_s9 = ssub.s32 %s1195_s26, %s1621_s6  ;;  %p1310_p3 = por %p85_p2, %p84_p1 }
  0x14   : > { %p38_p4 = scmp.ge.s32.totalorder %s1623_s7, 2  ;;  %p90_p5 = scmp.ne.s32.totalorder %s1179_s22, %s1175_s21 }
  0x15   : > { %p91_p6 = scmp.eq.s32.totalorder %s784_s29, 0  ;;  %s183_s11 = sadd.s32 1, %s1171_s20 }
  0x16   : > { %s1625_s7 = smov (%p38_p4, %s1623_s7), 0  ;;  %p193_p8 = scmp.ne.s32.totalorder %s1171_s20, %s1167_s19 }
  0x17   : > { %1595 = sst [smem:[#allocation12_spill]] %s1625_s7  ;;  %p1318_p7 = por %p91_p6, %p90_p5 }
  0x18   : > { %s72_s13 = ssub.s32 %s1199_s27, %s1625_s7  ;;  %p194_p9 = scmp.eq.s32.totalorder %s784_s29, 3 }
  0x19   : > { %s74_s14 = sor.u32 %s73_s9, %s72_s13  ;;  %p181_p10 = scmp.eq.s32.totalorder %s72_s13, 0 }
  0x1a   : > { %p75_p11 = scmp.eq.s32.totalorder %s74_s14, 0  ;;  %p1326_p12 = por %p194_p9, %p193_p8 }
  0x1b   : > { %s1331_s16 = scalar_select %p181_p10, %s1171_s20, %s183_s11  }
  0x1c   : > { %s1597_s15 = scalar_select %p1326_p12, 1, 0 }
  0x1d   : > { %s1334_s17 = scalar_select %p75_p11, %s1183_s23, %s77_s8  }
  0x1e   : > { %p199_p13 = scmp.ne.s32.totalorder %s1167_s19, %s1163_s18  ;;  %p200_p0 = scmp.eq.s32.totalorder %s785_s30, 3 }
  0x1f   : > { %1598 = sst [smem:[#allocation13_spill]] %s1334_s17  ;;  %p954_p1 = scmp.lt.s32.totalorder %s1203_s28, 4 }
  0x20   : > { %p1339_p2 = por %p200_p0, %p199_p13  ;;  %s240_s29 = sand.u32 1, %s1183_s23  }
  0x21   : > { %s789_s9 = sshll.u32 %s240_s29, 8  ;;  %s791_s13 = sshll.u32 %s1195_s26, 1 }
  0x22   : > { %s1599_s21 = scalar_select %p1339_p2, 1, 0 }
  0x23   : > { %s825_s14 = sshll.u32 %s1199_s27, 6  ;;  %s244_s7 = scalar_lea.vmem [#allocation2], %s789_s9 }
  0x24   : > { %s254_s6 = sshll.u32 %s244_s7, 4  ;;  %s251_s5 = sadd.s32 %s825_s14, %s791_s13  ;;  %s1346_s6 = int_to_ptr.vmem [resolvable:$true] %s254_s6 }
  0x25   : > { %s793_s11 = sshll.u32 %s251_s5, 7  ;;  %p1350_p4 = pnand %p954_p1, %p1310_p3 }
  0x26   : > { %s1601_s1 = sld [smem:[#allocation14_spill]]  ;;  %s1360_s7 = scalar_lea.sflag [#allocation3], %s240_s29 }
  0x27   : > { %p1053_p3 = pneg %p1350_p4 }
  0x2c   : > { %s1357_s23 = scalar_lea.hbm %s1601_s1, %s793_s11  ;;  %s1056_s9 = scalar_lea.hbm %s1601_s1, 16384 }
  0x2d   : > { %s1051_s5 = scalar_lea.hbm %s1357_s23, 4096  ;;  %p1057_p10 = scmp.lt.u32.totalorder %s1357_s23, %s1601_s1 }
  0x2e   : > { %p1052_p6 = scmp.ne.s32.totalorder %s1357_s23, %s1051_s5  ;;  %p1058_p11 = scmp.lt.u32.totalorder %s1056_s9, %s1051_s5 }
  0x2f   : > { %p1060_p0 = scmp.lt.u32.totalorder %s1051_s5, %s1357_s23 }
  0x30   : > { %p1054_p8 = pnand %p1053_p3, %p1052_p6  ;;  %p1059_p13 = por %p1058_p11, %p1057_p10 }
  0x32   : > { %p1055_p9 = pneg %p1054_p8  ;;  %p1061_p1 = por %p1060_p0, %p1059_p13 }
  0x34   : > { %p1062_p5 = pnand %p1061_p1, %p1055_p9 }
  0x36   : > { %1065 = shalt.err (!%p1062_p5)
}
  0x37   : > { %s1066_s29 = scalar_lea.vmem %s1346_s6, 4096  ;;  %s1205_s11 = smov [#allocation2]  }
  0x38   : > { %p1067_p6 = scmp.ne.s32.totalorder %s1346_s6, %s1066_s29  ;;  %s1071_s30 = sshll.u32 %s1205_s11, 4  ;;  %s1072_s30 = int_to_ptr.vmem [resolvable:$false] %s1071_s30 }
  0x39   : > { %s1073_s10 = scalar_lea.vmem %s1072_s30, 8192  ;;  %p1074_p12 = scmp.lt.s32.totalorder %s1346_s6, %s1072_s30 }
  0x3a   : > { %p1069_p8 = pnand %p1067_p6, %p1053_p3  ;;  %p1075_p10 = scmp.lt.s32.totalorder %s1073_s10, %s1066_s29 }
  0x3c   : > { %p1070_p2 = pneg %p1069_p8  ;;  %p1076_p11 = por %p1075_p10, %p1074_p12 }
  0x3e   : > { %p1077_p13 = pnand %p1076_p11, %p1070_p2 }
  0x40   : > { %1080 = shalt.err (!%p1077_p13)
}
  0x41   : > { %s1206_s5 = smov 512   ;;  %s1207_s17 = smov 256  }
  0x42   : > { %s1208_s9 = smov 16   ;;  %p277_p5 = scmp.lt.s32.totalorder %s1203_s28, 5 }
  0x43   : > { %949 = dma.hbm_to_vmem [thread:$0]  (!%p1350_p4), %s1357_s23, 4096, %s1346_s6, %s1360_s7, %s1206_s5, %s1207_s17, %s1208_s9  }
  0x44   : > { %p1602_p3 = scmp.ge.s32.totalorder %s1203_s28, 1 }
  0x46   : > { %p278_p9 = pnand %p1602_p3, %p277_p5 }
  0x47   : > { %s283_s13 = sand.u32 (!%p278_p9), 1, %s1179_s22  }
  0x48   : > { %281 = sbr.rel (%p278_p9) target bundleno = 620 (0x26c), region = 40  ;;  %s795_s14 = sshll.u32 (!%p278_p9), %s283_s13, 8 }
  0x49   : > { %s284_s29 = scalar_lea.sflag (!%p278_p9), [#allocation3], %s283_s13  ;;  %s1392_s11 = scalar_lea.vmem (!%p278_p9), [#allocation2], %s795_s14 }
  0x4f   : > { %1154 = dma.done.wait (%p1318_p7), %s284_s29, 4096  }
  0x50   : > { %1156 = vsyncadd (%p1318_p7), %s284_s29, 4294963200  ;;  %s1585_s23 = sand.u32 1, %s1167_s19   ;;  %s797_s6 = sshll.u32 %s1187_s24, 1 }
  0x51   : > { %s796_s8 = sshll.u32 %s1585_s23, 3  ;;  %p338_p12 = scmp.lt.s32.totalorder %s797_s6, 3 }
  0x52   : > { %p347_p2 = scmp.lt.s32.totalorder %s1191_s25, 1  ;;  %s799_s10 = sshll.u32 %s1191_s25, 4 }
  0x53   : > { %s1627_s6 = smov (!%p338_p12, %s797_s6), 3  ;;  %p355_p7 = scmp.lt.s32.totalorder %s799_s10, 31 }
  0x54   : > { %s1404_s7 = scalar_select %p347_p2, %s1191_s25, 1 }
  0x55   : > { %s798_s30 = sshll.u32 %s1627_s6, 3  ;;  %s1629_s10 = smov (!%p355_p7, %s799_s10), 31 }
  0x56   : > { %s1410_s17 = scalar_lea.vmem %s1574_s0, %s798_s30  ;;  %s349_s14 = scalar_lea.vmem %s1576_s2, %s1404_s7 }
  0x57   : > { %s800_s29 = sshll.u32 %s1629_s10, 3  ;;  %s1421_s26 = scalar_lea.vmem [#allocation5], %s796_s8 }
  0x58   : > { %s1419_s27 = scalar_lea.vmem %s1578_s4, %s800_s29  ;;  %p801_p4 = scmp.ne.s32.totalorder %s1187_s24, 0 }
  0x59   : > { %v1209_v0 = vmov (!%p801_p4), 0.0  }
  0x5a   : > { %363 = sbr.rel (%p801_p4) target bundleno = 97 (0x61), region = 48  ;;  %364 = vst [vmem:[%s1421_s26] sm:$0xff] (!%p801_p4), %v1209_v0 }
  0x61 PF: > { %v369_v1 = vld [vmem:[%s1392_s11 + $0x8] sm:$0xff]  ;;  %v371_v2 = vld [vmem:[%s1392_s11 + $0x18] sm:$0xff]  ;;  %v368_v3 = vld [vmem:[%s1392_s11] sm:$0xff]  ;;  %p802_p0 = scmp.ne.s32.totalorder %s1187_s24, 1 }
  0x62   : > { %v878_v4 = vpack.c.bf16 %v371_v2, %v369_v1  ;;  %v370_v5 = vld [vmem:[%s1392_s11 + $0x10] sm:$0xff]  ;;  %v373_v6 = vld [vmem:[%s1392_s11 + $0x28] sm:$0xff]  ;;  %v375_v7 = vld [vmem:[%s1392_s11 + $0x38] sm:$0xff]  ;;  %vm501_vm0 = vcmask (!%p802_p0), 64512   ;;  %v1210_v57 = vmov (!%p802_p0), 0.0|0.0   ;;  %vm1211_vm2 = vmmov (!%p802_p0), 0  }
  0x63   : > { %v880_v8 = vpack.c.bf16 %v370_v5, %v368_v3  ;;  %v882_v9 = vpack.c.bf16 %v375_v7, %v373_v6  ;;  %v372_v10 = vld [vmem:[%s1392_s11 + $0x20] sm:$0xff]  ;;  %v374_v11 = vld [vmem:[%s1392_s11 + $0x30] sm:$0xff]  ;;  %v377_v12 = vld [vmem:[%s1392_s11 + $0x48] sm:$0xff]  ;;  %v1212_v60 = vmov (!%p802_p0), 0.0  }
  0x64   : > { %879 = vmatprep.subr.bf16.mxu0 %v878_v4  ;;  %v379_v13 = vld [vmem:[%s1392_s11 + $0x58] sm:$0xff]  ;;  %v884_v14 = vpack.c.bf16 %v374_v11, %v372_v10  ;;  %v367_v16 = vld [vmem:[%s1410_s17 + $0x8] sm:$0xff]  ;;  %v376_v17 = vld [vmem:[%s1392_s11 + $0x40] sm:$0xff] }
  0x65   : > { %881 = vmatpush1.bf16.xpose.msra.mxu0 %v880_v8  ;;  %v886_v15 = vpack.c.bf16 %v379_v13, %v377_v12  ;;  %464 = vmatprep.mubr.f32.mxu0 %v367_v16  ;;  %v378_v18 = vld [vmem:[%s1392_s11 + $0x50] sm:$0xff]  ;;  %v381_v19 = vld [vmem:[%s1392_s11 + $0x68] sm:$0xff]  ;;  %v383_v20 = vld [vmem:[%s1392_s11 + $0x78] sm:$0xff] }
  0x66   : > { %883 = vmatprep.subr.bf16.mxu0 %v882_v9  ;;  %v888_v21 = vpack.c.bf16 %v378_v18, %v376_v17  ;;  %v890_v22 = vpack.c.bf16 %v383_v20, %v381_v19  ;;  %v380_v23 = vld [vmem:[%s1392_s11 + $0x60] sm:$0xff]  ;;  %v382_v24 = vld [vmem:[%s1392_s11 + $0x70] sm:$0xff]  ;;  %v385_v25 = vld [vmem:[%s1392_s11 + $0x88] sm:$0xff] }
  0x67   : > { %v387_v26 = vld [vmem:[%s1392_s11 + $0x98] sm:$0xff]  ;;  %v892_v27 = vpack.c.bf16 %v382_v24, %v380_v23  ;;  %v384_v29 = vld [vmem:[%s1392_s11 + $0x80] sm:$0xff]  ;;  %v386_v30 = vld [vmem:[%s1392_s11 + $0x90] sm:$0xff] }
  0x68   : > { %v894_v28 = vpack.c.bf16 %v387_v26, %v385_v25  ;;  %v389_v31 = vld [vmem:[%s1392_s11 + $0xa8] sm:$0xff]  ;;  %v391_v32 = vld [vmem:[%s1392_s11 + $0xb8] sm:$0xff]  ;;  %v896_v33 = vpack.c.bf16 %v386_v30, %v384_v29  ;;  %v388_v35 = vld [vmem:[%s1392_s11 + $0xa0] sm:$0xff] }
  0x69   : > { %v898_v34 = vpack.c.bf16 %v391_v32, %v389_v31  ;;  %v390_v36 = vld [vmem:[%s1392_s11 + $0xb0] sm:$0xff]  ;;  %v393_v37 = vld [vmem:[%s1392_s11 + $0xc8] sm:$0xff]  ;;  %v395_v38 = vld [vmem:[%s1392_s11 + $0xd8] sm:$0xff] }
  0x6a   : > { %v900_v39 = vpack.c.bf16 %v390_v36, %v388_v35  ;;  %v902_v40 = vpack.c.bf16 %v395_v38, %v393_v37  ;;  %v392_v41 = vld [vmem:[%s1392_s11 + $0xc0] sm:$0xff]  ;;  %v394_v42 = vld [vmem:[%s1392_s11 + $0xd0] sm:$0xff]  ;;  %v397_v43 = vld [vmem:[%s1392_s11 + $0xe8] sm:$0xff] }
  0x6b   : > { %v399_v44 = vld [vmem:[%s1392_s11 + $0xf8] sm:$0xff]  ;;  %v904_v45 = vpack.c.bf16 %v394_v42, %v392_v41  ;;  %v396_v47 = vld [vmem:[%s1392_s11 + $0xe0] sm:$0xff]  ;;  %v398_v48 = vld [vmem:[%s1392_s11 + $0xf0] sm:$0xff] }
  0x6c   : > { %v906_v46 = vpack.c.bf16 %v399_v44, %v397_v43  ;;  %v908_v49 = vpack.c.bf16 %v398_v48, %v396_v47  ;;  %v366_v50 = vld [vmem:[%s1410_s17] sm:$0xff]  ;;  %v478_v56 = vld [vmem:[%s1419_s27 + $0x8] sm:$0xff] (!%p802_p0)  ;;  %vm1466_vm1 = vmpackc.low (!%p802_p0), %vm501_vm0, %vm501_vm0 }
  0x6d   : > { %885 = vmatpush1.bf16.xpose.msra.mxu0 %v884_v14  ;;  %v365_v51 = vld [vmem:[%s1421_s26] sm:$0xff]  ;;  %v479_v61 = vld [vmem:[%s1419_s27 + $0x10] sm:$0xff] (!%p802_p0)  ;;  %v480_v62 = vld [vmem:[%s1419_s27 + $0x18] sm:$0xff] (!%p802_p0) }
  0x6e   : > { %887 = vmatprep.subr.bf16.mxu0 %v886_v15  ;;  %v477_v55 = vld [vmem:[%s1419_s27] sm:$0xff] (!%p802_p0)  ;;  %v915_v63 = vpack.c.bf16 (!%p802_p0), %v480_v62, %v479_v61  ;;  %v482_v1 = vld [vmem:[%s1419_s27 + $0x28] sm:$0xff] (!%p802_p0)  ;;  %v483_v3 = vld [vmem:[%s1419_s27 + $0x30] sm:$0xff] (!%p802_p0) }
  0x6f   : > { %v911_v58 = vpack.c.bf16 (!%p802_p0), %v478_v56, %v477_v55  ;;  %v481_v0 = vld [vmem:[%s1419_s27 + $0x20] sm:$0xff] (!%p802_p0)  ;;  %v484_v4 = vld [vmem:[%s1419_s27 + $0x38] sm:$0xff] (!%p802_p0)  ;;  %v486_v7 = vld [vmem:[%s1419_s27 + $0x48] sm:$0xff] (!%p802_p0) }
  0x70   : > { %v919_v2 = vpack.c.bf16 (!%p802_p0), %v482_v1, %v481_v0  ;;  %v923_v5 = vpack.c.bf16 (!%p802_p0), %v484_v4, %v483_v3  ;;  %v485_v6 = vld [vmem:[%s1419_s27 + $0x40] sm:$0xff] (!%p802_p0)  ;;  %v487_v9 = vld [vmem:[%s1419_s27 + $0x50] sm:$0xff] (!%p802_p0)  ;;  %v488_v10 = vld [vmem:[%s1419_s27 + $0x58] sm:$0xff] (!%p802_p0) }
  0x71   : > { %v927_v8 = vpack.c.bf16 (!%p802_p0), %v486_v7, %v485_v6  ;;  %v931_v11 = vpack.c.bf16 (!%p802_p0), %v488_v10, %v487_v9  ;;  %v489_v12 = vld [vmem:[%s1419_s27 + $0x60] sm:$0xff] (!%p802_p0)  ;;  %v490_v13 = vld [vmem:[%s1419_s27 + $0x68] sm:$0xff] (!%p802_p0)  ;;  %v491_v15 = vld [vmem:[%s1419_s27 + $0x70] sm:$0xff] (!%p802_p0) }
  0x72   : > { %v935_v14 = vpack.c.bf16 (!%p802_p0), %v490_v13, %v489_v12  ;;  %v492_v16 = vld [vmem:[%s1419_s27 + $0x78] sm:$0xff] (!%p802_p0)  ;;  %v476_v18 = vld [vmem:[%s1577_s3] sm:$0xff] (!%p802_p0) }
  0x73   : > { %v939_v17 = vpack.c.bf16 (!%p802_p0), %v492_v16, %v491_v15  ;;  %v803_v19 = vld [vmem:[%s349_s14] ss:$0 sm:$0xff] (!%p802_p0) }
  0x75   : > { %889 = vmatpush1.bf16.xpose.msra.mxu0 %v888_v21 }
  0x76   : > { %891 = vmatprep.subr.bf16.mxu0 %v890_v22 }
  0x7d   : > { %893 = vmatpush1.bf16.xpose.msra.mxu0 %v892_v27 }
  0x7e   : > { %895 = vmatprep.subr.bf16.mxu0 %v894_v28 }
  0x85   : > { %897 = vmatpush1.bf16.xpose.msra.mxu0 %v896_v33 }
  0x86   : > { %899 = vmatprep.subr.bf16.mxu0 %v898_v34 }
  0x8d   : > { %901 = vmatpush1.bf16.xpose.msra.mxu0 %v900_v39 }
  0x8e   : > { %903 = vmatprep.subr.bf16.mxu0 %v902_v40 }
  0x95   : > { %905 = vmatpush1.bf16.xpose.msra.mxu0 %v904_v45 }
  0x96   : > { %907 = vmatprep.subr.bf16.mxu0 %v906_v46 }
  0x9d   : > { %909 = vmatpush1.bf16.xpose.msra.mxu0 %v908_v49 }
  0x9e   : > { %910 = vmatprep.subr.bf16.mxu0 (!%p802_p0), %v1210_v57 }
  0xa4   : > { %465 = vmatmul.mubr.f32.vlgmr.msra.gmra.mrb[0].mxu0 %v366_v50 }
  0xa5   : > { %875 = vmatprep.mubr.msk.f32.mxu0 (!%p802_p0), %vm1211_vm2, %v1212_v60  ;;  %913 = vmatpush3.bf16.xpose.msk.msra.mxu0 (!%p802_p0), %vm1466_vm1, %v911_v58 }
  0xa6   : > { %914 = vmatprep.subr.bf16.mxu0 (!%p802_p0), %v1210_v57 }
  0xad   : > { %917 = vmatpush3.bf16.xpose.msk.msra.mxu0 (!%p802_p0), %vm1466_vm1, %v915_v63 }
  0xae   : > { %918 = vmatprep.subr.bf16.mxu0 (!%p802_p0), %v1210_v57 }
  0xb5   : > { %921 = vmatpush3.bf16.xpose.msk.msra.mxu0 (!%p802_p0), %vm1466_vm1, %v919_v2 }
  0xb6   : > { %922 = vmatprep.subr.bf16.mxu0 (!%p802_p0), %v1210_v57 }
  0xbd   : > { %925 = vmatpush3.bf16.xpose.msk.msra.mxu0 (!%p802_p0), %vm1466_vm1, %v923_v5 }
  0xbe   : > { %926 = vmatprep.subr.bf16.mxu0 (!%p802_p0), %v1210_v57 }
  0xc5   : > { %929 = vmatpush3.bf16.xpose.msk.msra.mxu0 (!%p802_p0), %vm1466_vm1, %v927_v8 }
  0xc6   : > { %930 = vmatprep.subr.bf16.mxu0 (!%p802_p0), %v1210_v57 }
  0xcd   : > { %933 = vmatpush3.bf16.xpose.msk.msra.mxu0 (!%p802_p0), %vm1466_vm1, %v931_v11 }
  0xce   : > { %934 = vmatprep.subr.bf16.mxu0 (!%p802_p0), %v1210_v57 }
  0xd5   : > { %937 = vmatpush3.bf16.xpose.msk.msra.mxu0 (!%p802_p0), %vm1466_vm1, %v935_v14 }
  0xd6   : > { %938 = vmatprep.subr.bf16.mxu0 (!%p802_p0), %v1210_v57 }
  0xdd   : > { %941 = vmatpush3.bf16.xpose.msk.msra.mxu0 (!%p802_p0), %vm1466_vm1, %v939_v17 }
 0x174   : > { %475 = sbr.rel (%p802_p0) target bundleno = 593 (0x251), region = 52 }
 0x177   : > { %v466_v52 = vpop.f32.mrb[0].mxu0 }
 0x178   : > { %v470_v53 = vadd.f32 %v466_v52, %v365_v51  ;;  %v468_v54 = vpop.f32.mrb[1].mxu0  ;;  %876 = vmatmul.mubr.msk.f32.vlgmr.msra.gmra.mrb[0].mxu0 (!%p802_p0), %vm501_vm0, %v476_v18 }
 0x17a   : > { %471 = vst [vmem:[%s1421_s26] sm:$0xff] %v470_v53 }
 0x181   : > { %v493_v20 = vld [vmem:[%s1421_s26] sm:$0xff] }
 0x24b   : > { %v619_v21 = vpop.f32.mrb[0].mxu0 }
 0x24c   : > { %v620_v22 = vadd.f32 %v803_v19, %v619_v21  ;;  %v877_v23 = vpop.f32.mrb[1].mxu0 }
 0x24e   : > { %v623_v24 = vadd.f32 %v620_v22, %v493_v20 }
 0x250   : > { %624 = vst [vmem:[%s1421_s26] sm:$0xff] %v623_v24 }
 0x251 PF: > { %s822_s27 = sshll.u32 %s1191_s25, 7  ;;  %s1605_s30 = sld [smem:[#allocation15_spill]] }
 0x252   : > { %s641_s12 = sshll.u32 %s1421_s26, 4  ;;  %s1606_s7 = sand.u32 1, %s1167_s19   ;;  %s642_s12 = int_to_ptr.vmem [resolvable:$true] %s641_s12 }
 0x253   : > { %s626_s5 = scalar_lea.sflag [#allocation4], %s1606_s7  ;;  %s1081_s17 = scalar_lea.vmem %s642_s12, 128 }
 0x254   : > { %p1082_p1 = scmp.ne.s32.totalorder %s642_s12, %s1081_s17  ;;  %p1607_p6 = scmp.ne.s32.totalorder %s1597_s15, 0 }
 0x255   : > { %s1213_s9 = smov [#allocation5]  }
 0x256   : > { %p1083_p8 = pnand %p1082_p1, %p1607_p6  ;;  %s1085_s13 = sshll.u32 %s1213_s9, 4  ;;  %s1086_s13 = int_to_ptr.vmem [resolvable:$false] %s1085_s13 }
 0x257   : > { %s1515_s10 = scalar_lea.hbm %s1605_s30, %s822_s27  ;;  %s1087_s14 = scalar_lea.vmem %s1086_s13, 256 }
 0x258   : > { %p1084_p10 = pneg %p1083_p8  ;;  %p1088_p11 = scmp.lt.s32.totalorder %s642_s12, %s1086_s13 }
 0x259   : > { %p1089_p13 = scmp.lt.s32.totalorder %s1087_s14, %s1081_s17 }
 0x25b   : > { %p1090_p5 = por %p1089_p13, %p1088_p11 }
 0x25d   : > { %p1091_p3 = pnand %p1090_p5, %p1084_p10 }
 0x25f   : > { %1094 = shalt.err (!%p1091_p3)
}
 0x260   : > { %s1095_s25 = scalar_lea.hbm %s1515_s10, 128  ;;  %s1099_s1 = scalar_lea.hbm %s1605_s30, 256 }
 0x261   : > { %p1096_p9 = scmp.ne.s32.totalorder %s1515_s10, %s1095_s25  ;;  %p1100_p7 = scmp.lt.u32.totalorder %s1515_s10, %s1605_s30 }
 0x262   : > { %p1101_p4 = scmp.lt.u32.totalorder %s1099_s1, %s1095_s25  ;;  %p1103_p1 = scmp.lt.u32.totalorder %s1095_s25, %s1515_s10 }
 0x263   : > { %p1097_p12 = pnand %p1096_p9, %p1607_p6 }
 0x264   : > { %p1102_p0 = por %p1101_p4, %p1100_p7 }
 0x265   : > { %p1098_p2 = pneg %p1097_p12 }
 0x266   : > { %p1104_p8 = por %p1103_p1, %p1102_p0 }
 0x268   : > { %p1105_p10 = pnand %p1104_p8, %p1098_p2 }
 0x26a   : > { %1108 = shalt.err (!%p1105_p10)
}
 0x26b   : > { %944 = dma.vmem_to_hbm [thread:$0]  (%p1607_p6), %s642_s12, 128, %s1515_s10, %s626_s5  }
 0x26c PF: > { %p955_p11 = scmp.ge.s32.totalorder %s1203_s28, 2  ;;  %s653_s23 = sand.u32 1, %s1163_s18  }
 0x26d   : > { %p1608_p13 = scmp.ne.s32.totalorder %s1599_s21, 0  ;;  %s654_s27 = scalar_lea.sflag [#allocation4], %s653_s23 }
 0x26f   : > { %p951_p5 = pnand %p955_p11, %p1608_p13 }
 0x271   : > { %1158 = dma.done.wait (!%p951_p5), %s654_s27, 128  }
 0x272   : > { %1160 = vsyncadd (!%p951_p5), %s654_s27, 4294967168  ;;  %s21_s28 = sadd.s32 1, %s1203_s28   ;;  %s1609_s15 = sld [smem:[#allocation8_spill]] }
 0x273   : > { %p18_p3 = scmp.ge.s32.totalorder %s21_s28, 6   ;;  %s1610_s23 = sld [smem:[#allocation13_spill]] }
 0x274   : > { %s1611_s24 = sld [smem:[#allocation9_spill]]  ;;  %s1612_s25 = sld [smem:[#allocation10_spill]] }
 0x275   : > { %s1613_s26 = sld [smem:[#allocation11_spill]]  ;;  %s1614_s27 = sld [smem:[#allocation12_spill]] }
 0x276   : > { %s1615_s18 = smov %s1167_s19  ;;  %s1616_s19 = smov %s1171_s20 }
 0x277   : > { %s1617_s20 = smov %s1331_s16  ;;  %s1618_s21 = smov %s1179_s22 }
 0x278   : > { %s1619_s22 = smov %s1609_s15  ;;  %20 = sbr.rel (!%p18_p3) target bundleno = 12 (0xc), region = 105 }
 0x27f   :  { %659 = vsyncpa [#allocation3], 1 }
 0x280   :  { %661 = vsyncpa [#allocation3 + $0x1], 1 }
 0x281   :  { %662 = vsyncpa [#allocation4], 1 }
 0x282   :  { %664 = vsyncpa [#allocation4 + $0x1], 1 }

</bundles_post_ra>
